<compile_context>
chip_gen: v7x
topology: tpu7x:2x2x1
jax: 0.10.0
libtpu: 0.0.40
codegen_flags: <defaults>
</compile_context>

<pallas_src>
import jax
import jax.numpy as jnp
from jax.experimental import pallas as pl
from jax.experimental.pallas import tpu as pltpu

PADW = 128        # lane-dense output slab width
MAX_TILE = 512    # batch tile cap (VMEM-safe on v5e/v6e/v7x)


def _leaky_relu(v):
    return jnp.where(v > 0, v, 0.01 * v)


def embedding_kernel(x_ref, exp_a_ref, b_ref, a_sum_ref,
                     masks_ref, inv_masks_ref,
                     w1_ref, b1_ref, w2_ref, b2_ref, w3_ref, b3_ref,
                     out_ref):
    x = x_ref[...]                                  # (TB, D) f32
    TB, D = x.shape
    n_layers = masks_ref.shape[0]

    # ---- DiffFlow stand-in (elementwise affine flow, exact logdet) ----
    x = x * exp_a_ref[...] + b_ref[...]
    logdet = jnp.zeros((TB, 1), jnp.float32) + a_sum_ref[...]

    # ---- RealNVP coupling layers (L is small & static -> unrolled) ----
    for l in range(n_layers):
        mask = masks_ref[pl.ds(l, 1), :]            # (1, D)
        inv_mask = inv_masks_ref[pl.ds(l, 1), :]    # (1, D)
        x_m = x * mask

        # Fused scale+translation MLP: 3 dots per layer instead of 6.
        h = _leaky_relu(
            jnp.dot(x_m.astype(jnp.bfloat16), w1_ref[l],
                    preferred_element_type=jnp.float32)
            + b1_ref[pl.ds(l, 1), :])                       # (TB, 2H)
        h = _leaky_relu(
            jnp.dot(h.astype(jnp.bfloat16), w2_ref[l],
                    preferred_element_type=jnp.float32)
            + b2_ref[pl.ds(l, 1), :])                       # (TB, 2H)
        o = (jnp.dot(h.astype(jnp.bfloat16), w3_ref[l],
                     preferred_element_type=jnp.float32)
             + b3_ref[pl.ds(l, 1), :])                      # (TB, 2D)

        s = jnp.tanh(o[:, :D]) * inv_mask
        t = o[:, D:] * inv_mask

        # Affine coupling update + per-sample logdet (lane reduce -> XLU).
        x = x_m + inv_mask * (x * jnp.exp(s) + t)
        logdet = logdet + jnp.sum(s, axis=-1, keepdims=True)

    # Single lane-dense (TB, 128) store: [x | logdet | zeros].
    pad = jnp.zeros((TB, PADW - D - 1), jnp.float32)
    out_ref[...] = jnp.concatenate([x, logdet, pad], axis=-1)


def _round_up(n, m):
    return ((n + m - 1) // m) * m


def _const_spec(shape):
    nd = len(shape)
    return pl.BlockSpec(shape, lambda i, _nd=nd: (0,) * _nd)


def embedding_forward(X, fp):
    """X: (B, D) float32.  fp: output of prepare_fused_params.
    Returns (out2 (B, D), logdet (B,))."""
    B, D = X.shape
    assert D + 1 <= PADW
    TB = min(MAX_TILE, _round_up(B, 8))
    B_pad = _round_up(B, TB)
    if B_pad != B:
        X = jnp.pad(X, ((0, B_pad - B), (0, 0)))
    grid = (B_pad // TB,)

    param_inputs = (fp["exp_a"], fp["b"], fp["a_sum"],
                    fp["masks"], fp["inv_masks"],
                    fp["w1"], fp["b1"], fp["w2"], fp["b2"],
                    fp["w3"], fp["b3"])

    in_specs = ([pl.BlockSpec((TB, D), lambda i: (i, 0))]
                + [_const_spec(t.shape) for t in param_inputs])

    slab = pl.pallas_call(
        embedding_kernel,
        grid=grid,
        in_specs=in_specs,
        out_specs=pl.BlockSpec((TB, PADW), lambda i: (i, 0)),
        out_shape=jax.ShapeDtypeStruct((B_pad, PADW), jnp.float32),
        compiler_params=pltpu.CompilerParams(
            dimension_semantics=("parallel",)),
    )(X, *param_inputs)

    return slab[:B, :D], slab[:B, D]


def init_params(key, tica_dim, hid_dim, n_layers):
    D, H, L = tica_dim, hid_dim, n_layers
    keys = jax.random.split(key, 14)
    scale = 0.1

    def w(k, shape):
        return (scale * jax.random.normal(k, shape)).astype(jnp.float32)

    params = dict(
        a=w(keys[0], (1, D)),
        b=w(keys[1], (1, D)),
        ws1=w(keys[2], (L, D, H)), bs1=w(keys[3], (L, H)),
        ws2=w(keys[4], (L, H, H)), bs2=w(keys[5], (L, H)),
        ws3=w(keys[6], (L, H, D)), bs3=w(keys[7], (L, D)),
        wt1=w(keys[8], (L, D, H)), bt1=w(keys[9], (L, H)),
        wt2=w(keys[10], (L, H, H)), bt2=w(keys[11], (L, H)),
        wt3=w(keys[12], (L, H, D)), bt3=w(keys[13], (L, D)),
    )
    # Alternating binary checkerboard masks over feature dims.
    base = (jnp.arange(D) % 2).astype(jnp.float32)
    masks = jnp.stack([base if (l % 2 == 0) else 1.0 - base for l in range(L)])
    params["masks"] = masks
    return params


def prepare_fused_params(p):
    """One-time param transform: fuse scale/translation nets into single
    (block-diagonal) weights, cast weights to bf16, hoist exp(a)/sum(a)."""
    def block_diag(A, B):
        Lx, mA, nA = A.shape
        _, mB, nB = B.shape
        top = jnp.concatenate([A, jnp.zeros((Lx, mA, nB), A.dtype)], axis=2)
        bot = jnp.concatenate([jnp.zeros((Lx, mB, nA), B.dtype), B], axis=2)
        return jnp.concatenate([top, bot], axis=1)

    bf = jnp.bfloat16
    return dict(
        exp_a=jnp.exp(p["a"]).astype(jnp.float32),
        b=p["b"].astype(jnp.float32),
        a_sum=jnp.sum(p["a"]).reshape(1, 1).astype(jnp.float32),
        masks=p["masks"].astype(jnp.float32),
        inv_masks=(1.0 - p["masks"]).astype(jnp.float32),
        w1=jnp.concatenate([p["ws1"], p["wt1"]], axis=2).astype(bf),
        b1=jnp.concatenate([p["bs1"], p["bt1"]], axis=1).astype(jnp.float32),
        w2=block_diag(p["ws2"], p["wt2"]).astype(bf),
        b2=jnp.concatenate([p["bs2"], p["bt2"]], axis=1).astype(jnp.float32),
        w3=block_diag(p["ws3"], p["wt3"]).astype(bf),
        b3=jnp.concatenate([p["bs3"], p["bt3"]], axis=1).astype(jnp.float32),
    )


def reference_forward(X, p):
    """Pure-JAX reference (un-fused nets, f32 math, weights quantized to bf16
    the same way the kernel quantizes them)."""
    def q(w):
        return w.astype(jnp.bfloat16).astype(jnp.float32)

    x = X * jnp.exp(p["a"]) + p["b"]
    logdet = jnp.zeros((X.shape[0],)) + jnp.sum(p["a"])
    L = p["masks"].shape[0]
    for l in range(L):
        m = p["masks"][l][None, :]
        x_m = x * m
        h = _leaky_relu(x_m @ q(p["ws1"][l]) + p["bs1"][l])
        h = _leaky_relu(h @ q(p["ws2"][l]) + p["bs2"][l])
        s = jnp.tanh(h @ q(p["ws3"][l]) + p["bs3"][l]) * (1.0 - m)
        h = _leaky_relu(x_m @ q(p["wt1"][l]) + p["bt1"][l])
        h = _leaky_relu(h @ q(p["wt2"][l]) + p["bt2"][l])
        t = (h @ q(p["wt3"][l]) + p["bt3"][l]) * (1.0 - m)
        x = x_m + (1.0 - m) * (x * jnp.exp(s) + t)
        logdet = logdet + jnp.sum(s, axis=-1)
    return x, logdet


if __name__ == "__main__":
    # args: tica_dim=8, hidden_dim_nf=32, num_layers_nf=4 ; batch=8
    tica_dim, hid_dim, n_layers, batch = 8, 32, 4, 8

    key = jax.random.PRNGKey(0)
    kx, kp = jax.random.split(key)
    X = jax.random.normal(kx, (batch, tica_dim), dtype=jnp.float32)
    params = init_params(kp, tica_dim, hid_dim, n_layers)
    fused = prepare_fused_params(params)

    out2, logdet = embedding_forward(X, fused)
    out2, logdet = jax.block_until_ready((out2, logdet))

    ref_out, ref_logdet = reference_forward(X, params)
    # bf16 weights + bf16 dot inputs (f32 accumulate) -> loose-ish tolerance.
    assert jnp.allclose(out2, ref_out, atol=2e-2, rtol=2e-2), (
        float(jnp.max(jnp.abs(out2 - ref_out))))
    assert jnp.allclose(logdet, ref_logdet, atol=2e-2, rtol=2e-2), (
        float(jnp.max(jnp.abs(logdet - ref_logdet))))

    print("KERNEL_OK")
</pallas_src>

<mosaic_0001>
module attributes {stable_mosaic.version = 11 : i64} {
  func.func @embedding_kernel(%arg0: i32, %arg1: memref<8x8xf32, #tpu.memory_space<vmem>>, %arg2: memref<1x8xf32, #tpu.memory_space<vmem>>, %arg3: memref<1x8xf32, #tpu.memory_space<vmem>>, %arg4: memref<1x1xf32, #tpu.memory_space<vmem>>, %arg5: memref<4x8xf32, #tpu.memory_space<vmem>>, %arg6: memref<4x8xf32, #tpu.memory_space<vmem>>, %arg7: memref<4x8x64xbf16, #tpu.memory_space<vmem>>, %arg8: memref<4x64xf32, #tpu.memory_space<vmem>>, %arg9: memref<4x64x64xbf16, #tpu.memory_space<vmem>>, %arg10: memref<4x64xf32, #tpu.memory_space<vmem>>, %arg11: memref<4x64x16xbf16, #tpu.memory_space<vmem>>, %arg12: memref<4x16xf32, #tpu.memory_space<vmem>>, %arg13: memref<8x128xf32, #tpu.memory_space<vmem>>) attributes {dimension_semantics = [#tpu.dimension_semantics<parallel>], iteration_bounds = array<i64: 1>, scalar_prefetch = 0 : i64, scratch_operands = 0 : i64, tpu.core_type = #tpu.core_type<tc>, window_params = [{transform_indices = @transform_0, window_bounds = array<i64: 8, 8>}, {pipeline_mode = #tpu.pipeline_mode<synchronous>, transform_indices = @transform_1, window_bounds = array<i64: 1, 8>}, {pipeline_mode = #tpu.pipeline_mode<synchronous>, transform_indices = @transform_2, window_bounds = array<i64: 1, 8>}, {pipeline_mode = #tpu.pipeline_mode<synchronous>, transform_indices = @transform_3, window_bounds = array<i64: 1, 1>}, {pipeline_mode = #tpu.pipeline_mode<synchronous>, transform_indices = @transform_4, window_bounds = array<i64: 4, 8>}, {pipeline_mode = #tpu.pipeline_mode<synchronous>, transform_indices = @transform_5, window_bounds = array<i64: 4, 8>}, {pipeline_mode = #tpu.pipeline_mode<synchronous>, transform_indices = @transform_6, window_bounds = array<i64: 4, 8, 64>}, {pipeline_mode = #tpu.pipeline_mode<synchronous>, transform_indices = @transform_7, window_bounds = array<i64: 4, 64>}, {pipeline_mode = #tpu.pipeline_mode<synchronous>, transform_indices = @transform_8, window_bounds = array<i64: 4, 64, 64>}, {pipeline_mode = #tpu.pipeline_mode<synchronous>, transform_indices = @transform_9, window_bounds = array<i64: 4, 64>}, {pipeline_mode = #tpu.pipeline_mode<synchronous>, transform_indices = @transform_10, window_bounds = array<i64: 4, 64, 16>}, {pipeline_mode = #tpu.pipeline_mode<synchronous>, transform_indices = @transform_11, window_bounds = array<i64: 4, 16>}, {transform_indices = @transform_12, window_bounds = array<i64: 8, 128>}]} {
    %c0 = arith.constant 0 : index
    %c0_0 = arith.constant 0 : index
    %0 = vector.load %arg1[%c0, %c0_0] : memref<8x8xf32, #tpu.memory_space<vmem>>, vector<8x8xf32>
    %c0_1 = arith.constant 0 : index
    %c0_2 = arith.constant 0 : index
    %1 = vector.load %arg2[%c0_1, %c0_2] : memref<1x8xf32, #tpu.memory_space<vmem>>, vector<1x8xf32>
    %2 = vector.broadcast %1 : vector<1x8xf32> to vector<8x8xf32>
    %3 = arith.mulf %0, %2 : vector<8x8xf32>
    %c0_3 = arith.constant 0 : index
    %c0_4 = arith.constant 0 : index
    %4 = vector.load %arg3[%c0_3, %c0_4] : memref<1x8xf32, #tpu.memory_space<vmem>>, vector<1x8xf32>
    %5 = vector.broadcast %4 : vector<1x8xf32> to vector<8x8xf32>
    %6 = arith.addf %3, %5 : vector<8x8xf32>
    %cst = arith.constant 0.000000e+00 : f32
    %7 = vector.broadcast %cst : f32 to vector<8x1xf32>
    %c0_5 = arith.constant 0 : index
    %c0_6 = arith.constant 0 : index
    %8 = vector.load %arg4[%c0_5, %c0_6] : memref<1x1xf32, #tpu.memory_space<vmem>>, vector<1x1xf32>
    %9 = vector.broadcast %8 : vector<1x1xf32> to vector<8x1xf32>
    %10 = arith.addf %7, %9 : vector<8x1xf32>
    %c0_7 = arith.constant 0 : index
    %c0_8 = arith.constant 0 : index
    %11 = vector.load %arg5[%c0_7, %c0_8] : memref<4x8xf32, #tpu.memory_space<vmem>>, vector<1x8xf32>
    %c0_9 = arith.constant 0 : index
    %c0_10 = arith.constant 0 : index
    %12 = vector.load %arg6[%c0_9, %c0_10] : memref<4x8xf32, #tpu.memory_space<vmem>>, vector<1x8xf32>
    %13 = vector.broadcast %11 : vector<1x8xf32> to vector<8x8xf32>
    %14 = arith.mulf %6, %13 : vector<8x8xf32>
    %15 = arith.truncf %14 : vector<8x8xf32> to vector<8x8xbf16>
    %c0_11 = arith.constant 0 : index
    %c0_12 = arith.constant 0 : index
    %c0_13 = arith.constant 0 : index
    %16 = vector.load %arg7[%c0_11, %c0_12, %c0_13] : memref<4x8x64xbf16, #tpu.memory_space<vmem>>, vector<1x8x64xbf16>
    %17 = vector.shape_cast %16 : vector<1x8x64xbf16> to vector<8x64xbf16>
    %cst_14 = arith.constant dense<0.000000e+00> : vector<8x64xf32>
    %18 = tpu.matmul %15, %17, %cst_14 {dimension_numbers = #tpu.dot_dimension_numbers<[1], [0], [0], [1], [0, 0, 1, 1], [], []>} : vector<8x8xbf16>, vector<8x64xbf16>, vector<8x64xf32> -> vector<8x64xf32>
    %c0_15 = arith.constant 0 : index
    %c0_16 = arith.constant 0 : index
    %19 = vector.load %arg8[%c0_15, %c0_16] : memref<4x64xf32, #tpu.memory_space<vmem>>, vector<1x64xf32>
    %20 = vector.broadcast %19 : vector<1x64xf32> to vector<8x64xf32>
    %21 = arith.addf %18, %20 : vector<8x64xf32>
    %cst_17 = arith.constant 0.000000e+00 : f32
    %22 = vector.broadcast %cst_17 : f32 to vector<8x64xf32>
    %23 = arith.cmpf ogt, %21, %22 : vector<8x64xf32>
    %cst_18 = arith.constant 0.00999999977 : f32
    %24 = vector.broadcast %cst_18 : f32 to vector<8x64xf32>
    %25 = arith.mulf %24, %21 : vector<8x64xf32>
    %26 = arith.select %23, %21, %25 : vector<8x64xi1>, vector<8x64xf32>
    %27 = arith.truncf %26 : vector<8x64xf32> to vector<8x64xbf16>
    %c0_19 = arith.constant 0 : index
    %c0_20 = arith.constant 0 : index
    %c0_21 = arith.constant 0 : index
    %28 = vector.load %arg9[%c0_19, %c0_20, %c0_21] : memref<4x64x64xbf16, #tpu.memory_space<vmem>>, vector<1x64x64xbf16>
    %29 = vector.shape_cast %28 : vector<1x64x64xbf16> to vector<64x64xbf16>
    %cst_22 = arith.constant dense<0.000000e+00> : vector<8x64xf32>
    %30 = tpu.matmul %27, %29, %cst_22 {dimension_numbers = #tpu.dot_dimension_numbers<[1], [0], [0], [1], [0, 0, 1, 1], [], []>} : vector<8x64xbf16>, vector<64x64xbf16>, vector<8x64xf32> -> vector<8x64xf32>
    %c0_23 = arith.constant 0 : index
    %c0_24 = arith.constant 0 : index
    %31 = vector.load %arg10[%c0_23, %c0_24] : memref<4x64xf32, #tpu.memory_space<vmem>>, vector<1x64xf32>
    %32 = vector.broadcast %31 : vector<1x64xf32> to vector<8x64xf32>
    %33 = arith.addf %30, %32 : vector<8x64xf32>
    %cst_25 = arith.constant 0.000000e+00 : f32
    %34 = vector.broadcast %cst_25 : f32 to vector<8x64xf32>
    %35 = arith.cmpf ogt, %33, %34 : vector<8x64xf32>
    %cst_26 = arith.constant 0.00999999977 : f32
    %36 = vector.broadcast %cst_26 : f32 to vector<8x64xf32>
    %37 = arith.mulf %36, %33 : vector<8x64xf32>
    %38 = arith.select %35, %33, %37 : vector<8x64xi1>, vector<8x64xf32>
    %39 = arith.truncf %38 : vector<8x64xf32> to vector<8x64xbf16>
    %c0_27 = arith.constant 0 : index
    %c0_28 = arith.constant 0 : index
    %c0_29 = arith.constant 0 : index
    %40 = vector.load %arg11[%c0_27, %c0_28, %c0_29] : memref<4x64x16xbf16, #tpu.memory_space<vmem>>, vector<1x64x16xbf16>
    %41 = vector.shape_cast %40 : vector<1x64x16xbf16> to vector<64x16xbf16>
    %cst_30 = arith.constant dense<0.000000e+00> : vector<8x16xf32>
    %42 = tpu.matmul %39, %41, %cst_30 {dimension_numbers = #tpu.dot_dimension_numbers<[1], [0], [0], [1], [0, 0, 1, 1], [], []>} : vector<8x64xbf16>, vector<64x16xbf16>, vector<8x16xf32> -> vector<8x16xf32>
    %c0_31 = arith.constant 0 : index
    %c0_32 = arith.constant 0 : index
    %43 = vector.load %arg12[%c0_31, %c0_32] : memref<4x16xf32, #tpu.memory_space<vmem>>, vector<1x16xf32>
    %44 = vector.broadcast %43 : vector<1x16xf32> to vector<8x16xf32>
    %45 = arith.addf %42, %44 : vector<8x16xf32>
    %46 = vector.extract_strided_slice %45 {offsets = [0, 0], sizes = [8, 8], strides = [1, 1]} : vector<8x16xf32> to vector<8x8xf32>
    %47 = math.tanh %46 : vector<8x8xf32>
    %48 = vector.broadcast %12 : vector<1x8xf32> to vector<8x8xf32>
    %49 = arith.mulf %47, %48 : vector<8x8xf32>
    %50 = vector.extract_strided_slice %45 {offsets = [0, 8], sizes = [8, 8], strides = [1, 1]} : vector<8x16xf32> to vector<8x8xf32>
    %51 = vector.broadcast %12 : vector<1x8xf32> to vector<8x8xf32>
    %52 = arith.mulf %50, %51 : vector<8x8xf32>
    %53 = math.exp %49 : vector<8x8xf32>
    %54 = arith.mulf %6, %53 : vector<8x8xf32>
    %55 = arith.addf %54, %52 : vector<8x8xf32>
    %56 = vector.broadcast %12 : vector<1x8xf32> to vector<8x8xf32>
    %57 = arith.mulf %56, %55 : vector<8x8xf32>
    %58 = arith.addf %14, %57 : vector<8x8xf32>
    %cst_33 = arith.constant dense<0.000000e+00> : vector<8xf32>
    %59 = vector.multi_reduction <add>, %49, %cst_33 [1] : vector<8x8xf32> to vector<8xf32>
    %60 = vector.shape_cast %59 : vector<8xf32> to vector<8x1xf32>
    %61 = arith.addf %10, %60 : vector<8x1xf32>
    %c1 = arith.constant 1 : index
    %c0_34 = arith.constant 0 : index
    %62 = vector.load %arg5[%c1, %c0_34] : memref<4x8xf32, #tpu.memory_space<vmem>>, vector<1x8xf32>
    %c1_35 = arith.constant 1 : index
    %c0_36 = arith.constant 0 : index
    %63 = vector.load %arg6[%c1_35, %c0_36] : memref<4x8xf32, #tpu.memory_space<vmem>>, vector<1x8xf32>
    %64 = vector.broadcast %62 : vector<1x8xf32> to vector<8x8xf32>
    %65 = arith.mulf %58, %64 : vector<8x8xf32>
    %66 = arith.truncf %65 : vector<8x8xf32> to vector<8x8xbf16>
    %c1_37 = arith.constant 1 : index
    %c0_38 = arith.constant 0 : index
    %c0_39 = arith.constant 0 : index
    %67 = vector.load %arg7[%c1_37, %c0_38, %c0_39] : memref<4x8x64xbf16, #tpu.memory_space<vmem>>, vector<1x8x64xbf16>
    %68 = vector.shape_cast %67 : vector<1x8x64xbf16> to vector<8x64xbf16>
    %cst_40 = arith.constant dense<0.000000e+00> : vector<8x64xf32>
    %69 = tpu.matmul %66, %68, %cst_40 {dimension_numbers = #tpu.dot_dimension_numbers<[1], [0], [0], [1], [0, 0, 1, 1], [], []>} : vector<8x8xbf16>, vector<8x64xbf16>, vector<8x64xf32> -> vector<8x64xf32>
    %c1_41 = arith.constant 1 : index
    %c0_42 = arith.constant 0 : index
    %70 = vector.load %arg8[%c1_41, %c0_42] : memref<4x64xf32, #tpu.memory_space<vmem>>, vector<1x64xf32>
    %71 = vector.broadcast %70 : vector<1x64xf32> to vector<8x64xf32>
    %72 = arith.addf %69, %71 : vector<8x64xf32>
    %cst_43 = arith.constant 0.000000e+00 : f32
    %73 = vector.broadcast %cst_43 : f32 to vector<8x64xf32>
    %74 = arith.cmpf ogt, %72, %73 : vector<8x64xf32>
    %cst_44 = arith.constant 0.00999999977 : f32
    %75 = vector.broadcast %cst_44 : f32 to vector<8x64xf32>
    %76 = arith.mulf %75, %72 : vector<8x64xf32>
    %77 = arith.select %74, %72, %76 : vector<8x64xi1>, vector<8x64xf32>
    %78 = arith.truncf %77 : vector<8x64xf32> to vector<8x64xbf16>
    %c1_45 = arith.constant 1 : index
    %c0_46 = arith.constant 0 : index
    %c0_47 = arith.constant 0 : index
    %79 = vector.load %arg9[%c1_45, %c0_46, %c0_47] : memref<4x64x64xbf16, #tpu.memory_space<vmem>>, vector<1x64x64xbf16>
    %80 = vector.shape_cast %79 : vector<1x64x64xbf16> to vector<64x64xbf16>
    %cst_48 = arith.constant dense<0.000000e+00> : vector<8x64xf32>
    %81 = tpu.matmul %78, %80, %cst_48 {dimension_numbers = #tpu.dot_dimension_numbers<[1], [0], [0], [1], [0, 0, 1, 1], [], []>} : vector<8x64xbf16>, vector<64x64xbf16>, vector<8x64xf32> -> vector<8x64xf32>
    %c1_49 = arith.constant 1 : index
    %c0_50 = arith.constant 0 : index
    %82 = vector.load %arg10[%c1_49, %c0_50] : memref<4x64xf32, #tpu.memory_space<vmem>>, vector<1x64xf32>
    %83 = vector.broadcast %82 : vector<1x64xf32> to vector<8x64xf32>
    %84 = arith.addf %81, %83 : vector<8x64xf32>
    %cst_51 = arith.constant 0.000000e+00 : f32
    %85 = vector.broadcast %cst_51 : f32 to vector<8x64xf32>
    %86 = arith.cmpf ogt, %84, %85 : vector<8x64xf32>
    %cst_52 = arith.constant 0.00999999977 : f32
    %87 = vector.broadcast %cst_52 : f32 to vector<8x64xf32>
    %88 = arith.mulf %87, %84 : vector<8x64xf32>
    %89 = arith.select %86, %84, %88 : vector<8x64xi1>, vector<8x64xf32>
    %90 = arith.truncf %89 : vector<8x64xf32> to vector<8x64xbf16>
    %c1_53 = arith.constant 1 : index
    %c0_54 = arith.constant 0 : index
    %c0_55 = arith.constant 0 : index
    %91 = vector.load %arg11[%c1_53, %c0_54, %c0_55] : memref<4x64x16xbf16, #tpu.memory_space<vmem>>, vector<1x64x16xbf16>
    %92 = vector.shape_cast %91 : vector<1x64x16xbf16> to vector<64x16xbf16>
    %cst_56 = arith.constant dense<0.000000e+00> : vector<8x16xf32>
    %93 = tpu.matmul %90, %92, %cst_56 {dimension_numbers = #tpu.dot_dimension_numbers<[1], [0], [0], [1], [0, 0, 1, 1], [], []>} : vector<8x64xbf16>, vector<64x16xbf16>, vector<8x16xf32> -> vector<8x16xf32>
    %c1_57 = arith.constant 1 : index
    %c0_58 = arith.constant 0 : index
    %94 = vector.load %arg12[%c1_57, %c0_58] : memref<4x16xf32, #tpu.memory_space<vmem>>, vector<1x16xf32>
    %95 = vector.broadcast %94 : vector<1x16xf32> to vector<8x16xf32>
    %96 = arith.addf %93, %95 : vector<8x16xf32>
    %97 = vector.extract_strided_slice %96 {offsets = [0, 0], sizes = [8, 8], strides = [1, 1]} : vector<8x16xf32> to vector<8x8xf32>
    %98 = math.tanh %97 : vector<8x8xf32>
    %99 = vector.broadcast %63 : vector<1x8xf32> to vector<8x8xf32>
    %100 = arith.mulf %98, %99 : vector<8x8xf32>
    %101 = vector.extract_strided_slice %96 {offsets = [0, 8], sizes = [8, 8], strides = [1, 1]} : vector<8x16xf32> to vector<8x8xf32>
    %102 = vector.broadcast %63 : vector<1x8xf32> to vector<8x8xf32>
    %103 = arith.mulf %101, %102 : vector<8x8xf32>
    %104 = math.exp %100 : vector<8x8xf32>
    %105 = arith.mulf %58, %104 : vector<8x8xf32>
    %106 = arith.addf %105, %103 : vector<8x8xf32>
    %107 = vector.broadcast %63 : vector<1x8xf32> to vector<8x8xf32>
    %108 = arith.mulf %107, %106 : vector<8x8xf32>
    %109 = arith.addf %65, %108 : vector<8x8xf32>
    %cst_59 = arith.constant dense<0.000000e+00> : vector<8xf32>
    %110 = vector.multi_reduction <add>, %100, %cst_59 [1] : vector<8x8xf32> to vector<8xf32>
    %111 = vector.shape_cast %110 : vector<8xf32> to vector<8x1xf32>
    %112 = arith.addf %61, %111 : vector<8x1xf32>
    %c2 = arith.constant 2 : index
    %c0_60 = arith.constant 0 : index
    %113 = vector.load %arg5[%c2, %c0_60] : memref<4x8xf32, #tpu.memory_space<vmem>>, vector<1x8xf32>
    %c2_61 = arith.constant 2 : index
    %c0_62 = arith.constant 0 : index
    %114 = vector.load %arg6[%c2_61, %c0_62] : memref<4x8xf32, #tpu.memory_space<vmem>>, vector<1x8xf32>
    %115 = vector.broadcast %113 : vector<1x8xf32> to vector<8x8xf32>
    %116 = arith.mulf %109, %115 : vector<8x8xf32>
    %117 = arith.truncf %116 : vector<8x8xf32> to vector<8x8xbf16>
    %c2_63 = arith.constant 2 : index
    %c0_64 = arith.constant 0 : index
    %c0_65 = arith.constant 0 : index
    %118 = vector.load %arg7[%c2_63, %c0_64, %c0_65] : memref<4x8x64xbf16, #tpu.memory_space<vmem>>, vector<1x8x64xbf16>
    %119 = vector.shape_cast %118 : vector<1x8x64xbf16> to vector<8x64xbf16>
    %cst_66 = arith.constant dense<0.000000e+00> : vector<8x64xf32>
    %120 = tpu.matmul %117, %119, %cst_66 {dimension_numbers = #tpu.dot_dimension_numbers<[1], [0], [0], [1], [0, 0, 1, 1], [], []>} : vector<8x8xbf16>, vector<8x64xbf16>, vector<8x64xf32> -> vector<8x64xf32>
    %c2_67 = arith.constant 2 : index
    %c0_68 = arith.constant 0 : index
    %121 = vector.load %arg8[%c2_67, %c0_68] : memref<4x64xf32, #tpu.memory_space<vmem>>, vector<1x64xf32>
    %122 = vector.broadcast %121 : vector<1x64xf32> to vector<8x64xf32>
    %123 = arith.addf %120, %122 : vector<8x64xf32>
    %cst_69 = arith.constant 0.000000e+00 : f32
    %124 = vector.broadcast %cst_69 : f32 to vector<8x64xf32>
    %125 = arith.cmpf ogt, %123, %124 : vector<8x64xf32>
    %cst_70 = arith.constant 0.00999999977 : f32
    %126 = vector.broadcast %cst_70 : f32 to vector<8x64xf32>
    %127 = arith.mulf %126, %123 : vector<8x64xf32>
    %128 = arith.select %125, %123, %127 : vector<8x64xi1>, vector<8x64xf32>
    %129 = arith.truncf %128 : vector<8x64xf32> to vector<8x64xbf16>
    %c2_71 = arith.constant 2 : index
    %c0_72 = arith.constant 0 : index
    %c0_73 = arith.constant 0 : index
    %130 = vector.load %arg9[%c2_71, %c0_72, %c0_73] : memref<4x64x64xbf16, #tpu.memory_space<vmem>>, vector<1x64x64xbf16>
    %131 = vector.shape_cast %130 : vector<1x64x64xbf16> to vector<64x64xbf16>
    %cst_74 = arith.constant dense<0.000000e+00> : vector<8x64xf32>
    %132 = tpu.matmul %129, %131, %cst_74 {dimension_numbers = #tpu.dot_dimension_numbers<[1], [0], [0], [1], [0, 0, 1, 1], [], []>} : vector<8x64xbf16>, vector<64x64xbf16>, vector<8x64xf32> -> vector<8x64xf32>
    %c2_75 = arith.constant 2 : index
    %c0_76 = arith.constant 0 : index
    %133 = vector.load %arg10[%c2_75, %c0_76] : memref<4x64xf32, #tpu.memory_space<vmem>>, vector<1x64xf32>
    %134 = vector.broadcast %133 : vector<1x64xf32> to vector<8x64xf32>
    %135 = arith.addf %132, %134 : vector<8x64xf32>
    %cst_77 = arith.constant 0.000000e+00 : f32
    %136 = vector.broadcast %cst_77 : f32 to vector<8x64xf32>
    %137 = arith.cmpf ogt, %135, %136 : vector<8x64xf32>
    %cst_78 = arith.constant 0.00999999977 : f32
    %138 = vector.broadcast %cst_78 : f32 to vector<8x64xf32>
    %139 = arith.mulf %138, %135 : vector<8x64xf32>
    %140 = arith.select %137, %135, %139 : vector<8x64xi1>, vector<8x64xf32>
    %141 = arith.truncf %140 : vector<8x64xf32> to vector<8x64xbf16>
    %c2_79 = arith.constant 2 : index
    %c0_80 = arith.constant 0 : index
    %c0_81 = arith.constant 0 : index
    %142 = vector.load %arg11[%c2_79, %c0_80, %c0_81] : memref<4x64x16xbf16, #tpu.memory_space<vmem>>, vector<1x64x16xbf16>
    %143 = vector.shape_cast %142 : vector<1x64x16xbf16> to vector<64x16xbf16>
    %cst_82 = arith.constant dense<0.000000e+00> : vector<8x16xf32>
    %144 = tpu.matmul %141, %143, %cst_82 {dimension_numbers = #tpu.dot_dimension_numbers<[1], [0], [0], [1], [0, 0, 1, 1], [], []>} : vector<8x64xbf16>, vector<64x16xbf16>, vector<8x16xf32> -> vector<8x16xf32>
    %c2_83 = arith.constant 2 : index
    %c0_84 = arith.constant 0 : index
    %145 = vector.load %arg12[%c2_83, %c0_84] : memref<4x16xf32, #tpu.memory_space<vmem>>, vector<1x16xf32>
    %146 = vector.broadcast %145 : vector<1x16xf32> to vector<8x16xf32>
    %147 = arith.addf %144, %146 : vector<8x16xf32>
    %148 = vector.extract_strided_slice %147 {offsets = [0, 0], sizes = [8, 8], strides = [1, 1]} : vector<8x16xf32> to vector<8x8xf32>
    %149 = math.tanh %148 : vector<8x8xf32>
    %150 = vector.broadcast %114 : vector<1x8xf32> to vector<8x8xf32>
    %151 = arith.mulf %149, %150 : vector<8x8xf32>
    %152 = vector.extract_strided_slice %147 {offsets = [0, 8], sizes = [8, 8], strides = [1, 1]} : vector<8x16xf32> to vector<8x8xf32>
    %153 = vector.broadcast %114 : vector<1x8xf32> to vector<8x8xf32>
    %154 = arith.mulf %152, %153 : vector<8x8xf32>
    %155 = math.exp %151 : vector<8x8xf32>
    %156 = arith.mulf %109, %155 : vector<8x8xf32>
    %157 = arith.addf %156, %154 : vector<8x8xf32>
    %158 = vector.broadcast %114 : vector<1x8xf32> to vector<8x8xf32>
    %159 = arith.mulf %158, %157 : vector<8x8xf32>
    %160 = arith.addf %116, %159 : vector<8x8xf32>
    %cst_85 = arith.constant dense<0.000000e+00> : vector<8xf32>
    %161 = vector.multi_reduction <add>, %151, %cst_85 [1] : vector<8x8xf32> to vector<8xf32>
    %162 = vector.shape_cast %161 : vector<8xf32> to vector<8x1xf32>
    %163 = arith.addf %112, %162 : vector<8x1xf32>
    %c3 = arith.constant 3 : index
    %c0_86 = arith.constant 0 : index
    %164 = vector.load %arg5[%c3, %c0_86] : memref<4x8xf32, #tpu.memory_space<vmem>>, vector<1x8xf32>
    %c3_87 = arith.constant 3 : index
    %c0_88 = arith.constant 0 : index
    %165 = vector.load %arg6[%c3_87, %c0_88] : memref<4x8xf32, #tpu.memory_space<vmem>>, vector<1x8xf32>
    %166 = vector.broadcast %164 : vector<1x8xf32> to vector<8x8xf32>
    %167 = arith.mulf %160, %166 : vector<8x8xf32>
    %168 = arith.truncf %167 : vector<8x8xf32> to vector<8x8xbf16>
    %c3_89 = arith.constant 3 : index
    %c0_90 = arith.constant 0 : index
    %c0_91 = arith.constant 0 : index
    %169 = vector.load %arg7[%c3_89, %c0_90, %c0_91] : memref<4x8x64xbf16, #tpu.memory_space<vmem>>, vector<1x8x64xbf16>
    %170 = vector.shape_cast %169 : vector<1x8x64xbf16> to vector<8x64xbf16>
    %cst_92 = arith.constant dense<0.000000e+00> : vector<8x64xf32>
    %171 = tpu.matmul %168, %170, %cst_92 {dimension_numbers = #tpu.dot_dimension_numbers<[1], [0], [0], [1], [0, 0, 1, 1], [], []>} : vector<8x8xbf16>, vector<8x64xbf16>, vector<8x64xf32> -> vector<8x64xf32>
    %c3_93 = arith.constant 3 : index
    %c0_94 = arith.constant 0 : index
    %172 = vector.load %arg8[%c3_93, %c0_94] : memref<4x64xf32, #tpu.memory_space<vmem>>, vector<1x64xf32>
    %173 = vector.broadcast %172 : vector<1x64xf32> to vector<8x64xf32>
    %174 = arith.addf %171, %173 : vector<8x64xf32>
    %cst_95 = arith.constant 0.000000e+00 : f32
    %175 = vector.broadcast %cst_95 : f32 to vector<8x64xf32>
    %176 = arith.cmpf ogt, %174, %175 : vector<8x64xf32>
    %cst_96 = arith.constant 0.00999999977 : f32
    %177 = vector.broadcast %cst_96 : f32 to vector<8x64xf32>
    %178 = arith.mulf %177, %174 : vector<8x64xf32>
    %179 = arith.select %176, %174, %178 : vector<8x64xi1>, vector<8x64xf32>
    %180 = arith.truncf %179 : vector<8x64xf32> to vector<8x64xbf16>
    %c3_97 = arith.constant 3 : index
    %c0_98 = arith.constant 0 : index
    %c0_99 = arith.constant 0 : index
    %181 = vector.load %arg9[%c3_97, %c0_98, %c0_99] : memref<4x64x64xbf16, #tpu.memory_space<vmem>>, vector<1x64x64xbf16>
    %182 = vector.shape_cast %181 : vector<1x64x64xbf16> to vector<64x64xbf16>
    %cst_100 = arith.constant dense<0.000000e+00> : vector<8x64xf32>
    %183 = tpu.matmul %180, %182, %cst_100 {dimension_numbers = #tpu.dot_dimension_numbers<[1], [0], [0], [1], [0, 0, 1, 1], [], []>} : vector<8x64xbf16>, vector<64x64xbf16>, vector<8x64xf32> -> vector<8x64xf32>
    %c3_101 = arith.constant 3 : index
    %c0_102 = arith.constant 0 : index
    %184 = vector.load %arg10[%c3_101, %c0_102] : memref<4x64xf32, #tpu.memory_space<vmem>>, vector<1x64xf32>
    %185 = vector.broadcast %184 : vector<1x64xf32> to vector<8x64xf32>
    %186 = arith.addf %183, %185 : vector<8x64xf32>
    %cst_103 = arith.constant 0.000000e+00 : f32
    %187 = vector.broadcast %cst_103 : f32 to vector<8x64xf32>
    %188 = arith.cmpf ogt, %186, %187 : vector<8x64xf32>
    %cst_104 = arith.constant 0.00999999977 : f32
    %189 = vector.broadcast %cst_104 : f32 to vector<8x64xf32>
    %190 = arith.mulf %189, %186 : vector<8x64xf32>
    %191 = arith.select %188, %186, %190 : vector<8x64xi1>, vector<8x64xf32>
    %192 = arith.truncf %191 : vector<8x64xf32> to vector<8x64xbf16>
    %c3_105 = arith.constant 3 : index
    %c0_106 = arith.constant 0 : index
    %c0_107 = arith.constant 0 : index
    %193 = vector.load %arg11[%c3_105, %c0_106, %c0_107] : memref<4x64x16xbf16, #tpu.memory_space<vmem>>, vector<1x64x16xbf16>
    %194 = vector.shape_cast %193 : vector<1x64x16xbf16> to vector<64x16xbf16>
    %cst_108 = arith.constant dense<0.000000e+00> : vector<8x16xf32>
    %195 = tpu.matmul %192, %194, %cst_108 {dimension_numbers = #tpu.dot_dimension_numbers<[1], [0], [0], [1], [0, 0, 1, 1], [], []>} : vector<8x64xbf16>, vector<64x16xbf16>, vector<8x16xf32> -> vector<8x16xf32>
    %c3_109 = arith.constant 3 : index
    %c0_110 = arith.constant 0 : index
    %196 = vector.load %arg12[%c3_109, %c0_110] : memref<4x16xf32, #tpu.memory_space<vmem>>, vector<1x16xf32>
    %197 = vector.broadcast %196 : vector<1x16xf32> to vector<8x16xf32>
    %198 = arith.addf %195, %197 : vector<8x16xf32>
    %199 = vector.extract_strided_slice %198 {offsets = [0, 0], sizes = [8, 8], strides = [1, 1]} : vector<8x16xf32> to vector<8x8xf32>
    %200 = math.tanh %199 : vector<8x8xf32>
    %201 = vector.broadcast %165 : vector<1x8xf32> to vector<8x8xf32>
    %202 = arith.mulf %200, %201 : vector<8x8xf32>
    %203 = vector.extract_strided_slice %198 {offsets = [0, 8], sizes = [8, 8], strides = [1, 1]} : vector<8x16xf32> to vector<8x8xf32>
    %204 = vector.broadcast %165 : vector<1x8xf32> to vector<8x8xf32>
    %205 = arith.mulf %203, %204 : vector<8x8xf32>
    %206 = math.exp %202 : vector<8x8xf32>
    %207 = arith.mulf %160, %206 : vector<8x8xf32>
    %208 = arith.addf %207, %205 : vector<8x8xf32>
    %209 = vector.broadcast %165 : vector<1x8xf32> to vector<8x8xf32>
    %210 = arith.mulf %209, %208 : vector<8x8xf32>
    %211 = arith.addf %167, %210 : vector<8x8xf32>
    %cst_111 = arith.constant dense<0.000000e+00> : vector<8xf32>
    %212 = vector.multi_reduction <add>, %202, %cst_111 [1] : vector<8x8xf32> to vector<8xf32>
    %213 = vector.shape_cast %212 : vector<8xf32> to vector<8x1xf32>
    %214 = arith.addf %163, %213 : vector<8x1xf32>
    %cst_112 = arith.constant 0.000000e+00 : f32
    %215 = vector.broadcast %cst_112 : f32 to vector<8x119xf32>
    %216 = tpu.concatenate %211, %214, %215 in 1 : vector<8x8xf32>, vector<8x1xf32>, vector<8x119xf32> -> vector<8x128xf32>
    %c0_113 = arith.constant 0 : index
    %c0_114 = arith.constant 0 : index
    %217 = vector.load %arg13[%c0_113, %c0_114] : memref<8x128xf32, #tpu.memory_space<vmem>>, vector<8x128xf32>
    tpu.vector_store %arg13[%c0_113, %c0_114], %216 {strides = array<i32>} : memref<8x128xf32, #tpu.memory_space<vmem>>, vector<8x128xf32>,
    return
  }
  func.func @transform_0(%arg0: i32) -> (i32, i32) {
    %c0_i32 = arith.constant 0 : i32
    %c0_i32_0 = arith.constant 0 : i32
    return %arg0, %c0_i32 : i32, i32
  }
  func.func @transform_1(%arg0: i32) -> (i32, i32) {
    %c0_i32 = arith.constant 0 : i32
    %c0_i32_0 = arith.constant 0 : i32
    %c0_i32_1 = arith.constant 0 : i32
    return %c0_i32, %c0_i32_0 : i32, i32
  }
  func.func @transform_2(%arg0: i32) -> (i32, i32) {
    %c0_i32 = arith.constant 0 : i32
    %c0_i32_0 = arith.constant 0 : i32
    %c0_i32_1 = arith.constant 0 : i32
    return %c0_i32, %c0_i32_0 : i32, i32
  }
  func.func @transform_3(%arg0: i32) -> (i32, i32) {
    %c0_i32 = arith.constant 0 : i32
    %c0_i32_0 = arith.constant 0 : i32
    %c0_i32_1 = arith.constant 0 : i32
    return %c0_i32, %c0_i32_0 : i32, i32
  }
  func.func @transform_4(%arg0: i32) -> (i32, i32) {
    %c0_i32 = arith.constant 0 : i32
    %c0_i32_0 = arith.constant 0 : i32
    %c0_i32_1 = arith.constant 0 : i32
    return %c0_i32, %c0_i32_0 : i32, i32
  }
  func.func @transform_5(%arg0: i32) -> (i32, i32) {
    %c0_i32 = arith.constant 0 : i32
    %c0_i32_0 = arith.constant 0 : i32
    %c0_i32_1 = arith.constant 0 : i32
    return %c0_i32, %c0_i32_0 : i32, i32
  }
  func.func @transform_6(%arg0: i32) -> (i32, i32, i32) {
    %c0_i32 = arith.constant 0 : i32
    %c0_i32_0 = arith.constant 0 : i32
    %c0_i32_1 = arith.constant 0 : i32
    %c0_i32_2 = arith.constant 0 : i32
    return %c0_i32, %c0_i32_0, %c0_i32_1 : i32, i32, i32
  }
  func.func @transform_7(%arg0: i32) -> (i32, i32) {
    %c0_i32 = arith.constant 0 : i32
    %c0_i32_0 = arith.constant 0 : i32
    %c0_i32_1 = arith.constant 0 : i32
    return %c0_i32, %c0_i32_0 : i32, i32
  }
  func.func @transform_8(%arg0: i32) -> (i32, i32, i32) {
    %c0_i32 = arith.constant 0 : i32
    %c0_i32_0 = arith.constant 0 : i32
    %c0_i32_1 = arith.constant 0 : i32
    %c0_i32_2 = arith.constant 0 : i32
    return %c0_i32, %c0_i32_0, %c0_i32_1 : i32, i32, i32
  }
  func.func @transform_9(%arg0: i32) -> (i32, i32) {
    %c0_i32 = arith.constant 0 : i32
    %c0_i32_0 = arith.constant 0 : i32
    %c0_i32_1 = arith.constant 0 : i32
    return %c0_i32, %c0_i32_0 : i32, i32
  }
  func.func @transform_10(%arg0: i32) -> (i32, i32, i32) {
    %c0_i32 = arith.constant 0 : i32
    %c0_i32_0 = arith.constant 0 : i32
    %c0_i32_1 = arith.constant 0 : i32
    %c0_i32_2 = arith.constant 0 : i32
    return %c0_i32, %c0_i32_0, %c0_i32_1 : i32, i32, i32
  }
  func.func @transform_11(%arg0: i32) -> (i32, i32) {
    %c0_i32 = arith.constant 0 : i32
    %c0_i32_0 = arith.constant 0 : i32
    %c0_i32_1 = arith.constant 0 : i32
    return %c0_i32, %c0_i32_0 : i32, i32
  }
  func.func @transform_12(%arg0: i32) -> (i32, i32) {
    %c0_i32 = arith.constant 0 : i32
    %c0_i32_0 = arith.constant 0 : i32
    return %arg0, %c0_i32 : i32, i32
  }
}

</mosaic_0001>

<bundles_post_ra>
// kernel: tpu_custom_call.1
= control target key start
LH: loop header
LB: loop body
LE: loop exit
PB: predicated region body
PF: predicated region fallthrough
CT: control target
= control target key end

     0   :  { %s1963_s0 = inlined_call_operand.vmem [shape: f32[8,8], index: 0, kind: input, shape index: {}]   ;;  %s1964_s1 = inlined_call_operand.vmem [shape: f32[1,8], index: 1, kind: input, shape index: {}]   ;;  %s1965_s2 = inlined_call_operand.hbm [shape: f32[1,8], index: 2, kind: input, shape index: {}]   ;;  %s1966_s3 = inlined_call_operand.<no memory space> [shape: f32[1,1], index: 3, kind: input, shape index: {}]   ;;  %s1967_s4 = inlined_call_operand.vmem [shape: f32[4,8], index: 4, kind: input, shape index: {}]   ;;  %s1968_s5 = inlined_call_operand.vmem [shape: f32[4,8], index: 5, kind: input, shape index: {}]   ;;  %s1969_s6 = inlined_call_operand.vmem [shape: bf16[4,8,64], index: 6, kind: input, shape index: {}]   ;;  %s1970_s7 = inlined_call_operand.vmem [shape: f32[4,64], index: 7, kind: input, shape index: {}]   ;;  %s1971_s8 = inlined_call_operand.vmem [shape: bf16[4,64,64], index: 8, kind: input, shape index: {}]   ;;  %s1972_s9 = inlined_call_operand.hbm [shape: f32[4,64], index: 9, kind: input, shape index: {}]   ;;  %s1973_s10 = inlined_call_operand.vmem [shape: bf16[4,64,16], index: 10, kind: input, shape index: {}]   ;;  %s1974_s11 = inlined_call_operand.vmem [shape: f32[4,16], index: 11, kind: input, shape index: {}]   ;;  %s1975_s12 = inlined_call_operand.hbm [shape: f32[8,128], index: 12, kind: output, shape index: {}]  }
   0x1   :  { %v17_v0 = vstv %s1966_s3 }
   0x2   :  { %18 = vst [vmem:[#allocation2] sm:$0x1] %v17_v0 }
   0x3   :  { %19 = vsyncpa [#allocation4], 0 }
   0x4   :  { %20 = vsyncpa [#allocation7], 0 }
   0x5   :  { %21 = vsyncpa [#allocation5], 0  ;;  %s1555_s23 = smov [#allocation3]   ;;  %s1556_s25 = smov [#allocation6]  }
   0x6   :  { %s32_s24 = sshll.u32 %s1555_s23, 4  ;;  %s54_s26 = sshll.u32 %s1556_s25, 4  ;;  %s33_s24 = int_to_ptr.vmem [resolvable:$true] %s32_s24  ;;  %s55_s26 = int_to_ptr.vmem [resolvable:$true] %s54_s26 }
   0x7   :  { %s1483_s29 = scalar_lea.hbm %s1965_s2, 16 }
   0x8   :  { %p1484_p0 = scmp.ne.s32.totalorder %s1965_s2, %s1483_s29  ;;  %p1487_p1 = scmp.lt.u32.totalorder %s1483_s29, %s1965_s2 }
   0xa   :  { %p1489_p2 = pnand %p1487_p1, %p1484_p0 }
   0xc   :  { %1492 = shalt.err (!%p1489_p2)
}
   0xd   :  { %s1493_s15 = scalar_lea.vmem %s33_s24, 16  ;;  %s1497_s16 = scalar_lea.vmem %s33_s24, 32 }
   0xe   :  { %p1494_p3 = scmp.ne.s32.totalorder %s33_s24, %s1493_s15  ;;  %p1498_p4 = scmp.lt.s32.totalorder %s33_s24, %s33_s24 }
   0xf   :  { %p1499_p5 = scmp.lt.s32.totalorder %s1497_s16, %s1493_s15 }
  0x11   :  { %p1500_p6 = por %p1499_p5, %p1498_p4 }
  0x13   :  { %p1501_p7 = pnand %p1500_p6, %p1494_p3 }
  0x15   :  { %1504 = shalt.err (!%p1501_p7)
}
  0x16   :  { %35 = dma.hbm_to_vmem [thread:$0]  %s1965_s2, 16, %s33_s24, [#allocation4]  }
  0x17   :  { %s1505_s21 = scalar_lea.hbm %s1972_s9, 64 }
  0x18   :  { %p1506_p8 = scmp.ne.s32.totalorder %s1972_s9, %s1505_s21  ;;  %p1509_p9 = scmp.lt.u32.totalorder %s1505_s21, %s1972_s9 }
  0x1a   :  { %p1511_p10 = pnand %p1509_p9, %p1506_p8 }
  0x1c   :  { %1514 = shalt.err (!%p1511_p10)
}
  0x1d   :  { %s1515_s28 = scalar_lea.vmem %s55_s26, 64  ;;  %p1520_p12 = scmp.lt.s32.totalorder %s55_s26, %s55_s26 }
  0x1e   :  { %p1516_p11 = scmp.ne.s32.totalorder %s55_s26, %s1515_s28  ;;  %p1521_p13 = scmp.lt.s32.totalorder %s1515_s28, %s1515_s28 }
  0x20   :  { %p1522_p0 = por %p1521_p13, %p1520_p12 }
  0x22   :  { %p1523_p1 = pnand %p1522_p0, %p1516_p11 }
  0x24   :  { %1526 = shalt.err (!%p1523_p1)
}
  0x25   :  { %57 = dma.hbm_to_vmem [thread:$0]  %s1972_s9, 64, %s55_s26, [#allocation7]  }
  0x26   :  { %1549 = dma.done.wait [#allocation4], 16  }
  0x27   :  { %1550 = vsyncadd [#allocation4], 4294967280 }
  0x28   :  { %1551 = dma.done.wait [#allocation7], 64  }
  0x29   :  { %1552 = vsyncadd [#allocation7], 4294967232  ;;  %v1557_v1 = vmov 0.0   ;;  %vm1558_vm0 = vmmov 0   ;;  %vm112_vm1 = vcmask 1043456   ;;  %v69_v3 = vld [vmem:[%s1963_s0] sm:$0xff] }
  0x2a   :  { %1308 = vmatprep.subr.bf16.mxu0 %v1557_v1  ;;  %1310 = vmatprep.mubr.msk.bf16.mxu0 %vm1558_vm0, %v1557_v1  ;;  %v102_v2 = vld [vmem:[%s1969_s6] sm:$0xf]  ;;  %vm108_vm2 = vcmask 64512   ;;  %v1436_v11 = vld [vmem:[%s1971_s8 + $0x8] sm:$0xff]   ;;  %v1437_v14 = vld [vmem:[%s1971_s8 + $0x10] sm:$0xff]   ;;  %vm197_vm4 = vcmask 523264  }
  0x2b   :  { %1314 = vmatprep.subr.bf16.mxu1 %v1557_v1  ;;  %1322 = vmatprep.mubr.msk.bf16.mxu1 %vm1558_vm0, %v1557_v1  ;;  %v1142_v4 = vld [vmem:[%s1964_s1] ss:$0 sm:$0xff]  ;;  %v114_v5 = vsel %vm112_vm1, %v102_v2, 0  ;;  %v1143_v7 = vld [vmem:[#allocation3] ss:$0 sm:$0xff]  ;;  %v1438_v15 = vld [vmem:[%s1971_s8 + $0x18] sm:$0xff]  }
  0x2c   :  { %v77_v6 = vmul.f32 %v1142_v4, %v69_v3  ;;  %v1145_v8 = vld [vmem:[%s1967_s4] ss:$0 sm:$0xff]  ;;  %1309 = vmatpush3.bf16.msra.mxu0 %v114_v5  ;;  %v1440_v17 = vld [vmem:[%s1973_s10 + $0x8] sm:$0xff]   ;;  %v1441_v27 = vld [vmem:[%s1973_s10 + $0x10] sm:$0xff]   ;;  %s1559_s14 = smov 8   ;;  %s1560_s0 = smov 120  }
  0x2d   :  { %v1435_v9 = vld [vmem:[%s1971_s8] sm:$0xff]   ;;  %1326 = vmatprep.subr.bf16.mxu0 %v1557_v1  ;;  %v1442_v28 = vld [vmem:[%s1973_s10 + $0x18] sm:$0xff]   ;;  %v1444_v54 = vld [vmem:[%s1971_s8 + $0x28] sm:$0xff]   ;;  %vm1123_vm12 = vcmask 72704  }
  0x2e   :  { %v1676_v10 = vadd.f32 %v1143_v7, %v77_v6  ;;  %1315 = vmatpush3.bf16.msra.mxu1 %v1435_v9  ;;  %v1439_v16 = vld [vmem:[%s1973_s10] sm:$0xff]   ;;  %v1445_v2 = vld [vmem:[%s1971_s8 + $0x30] sm:$0xff]   ;;  %v1446_v3 = vld [vmem:[%s1971_s8 + $0x38] sm:$0xff]  }
  0x2f   :  { %1316 = vmatprep.subr.bf16.mxu1 %v1557_v1  ;;  %v1146_v18 = vld [vmem:[%s1970_s7] ss:$0 sm:$0xff]  ;;  %v1148_v30 = vld [vmem:[#allocation6] ss:$0 sm:$0xff]  ;;  %v1162_v39 = vld [vmem:[%s1969_s6 + $0x4] sm:$0xf] }
  0x30   :  { %v1684_v12 = vmul.f32 %v1145_v8, %v1676_v10  ;;  %v1160_v29 = vld [vmem:[%s1968_s5] ss:$0 sm:$0xff]  ;;  %v369_v41 = vsel %vm112_vm1, %v1162_v39, 0  ;;  %v1741_v49 = vld [vmem:[%s1968_s5 + $0x2] ss:$0 sm:$0xff]  ;;  %v1448_v5 = vld [vmem:[%s1973_s10 + $0x28] sm:$0xff]  }
  0x31   :  { %332 = vrot.lane.b32.xlu0 %v1160_v29, %s1559_s14  ;;  %v1154_v40 = vld [vmem:[%s1974_s11] ss:$0 sm:$0xff]  ;;  %v1161_v61 = vld [vmem:[%s1967_s4 + $0x1] ss:$0 sm:$0xff] }
  0x32   :  { %v101_v13 = vpack.c.bf16 %v1684_v12, %v1684_v12  ;;  %1317 = vmatpush3.bf16.msra.mxu1 %v1436_v11  ;;  %v1443_v53 = vld [vmem:[%s1971_s8 + $0x20] sm:$0xff]  }
  0x33   :  { %1318 = vmatprep.subr.bf16.mxu1 %v1557_v1  ;;  %v1447_v4 = vld [vmem:[%s1973_s10 + $0x20] sm:$0xff]  }
  0x34   :  { %1311 = vmatmul.mubr.msk.bf16.vlgmr.msra.gmra.mrb[0].mxu0 %vm108_vm2, %v101_v13  ;;  %v1163_v6 = vld [vmem:[%s1970_s7 + $0x1] ss:$0 sm:$0xff] }
  0x35   :  { %1334 = vmatprep.mubr.msk.bf16.mxu0 %vm1558_vm0, %v1557_v1  ;;  %1327 = vmatpush3.bf16.msra.mxu0 %v1439_v16  ;;  %v1450_v16 = vld [vmem:[%s1973_s10 + $0x38] sm:$0xff]  }
  0x36   :  { %1319 = vmatpush3.bf16.msra.mxu1 %v1437_v14  ;;  %1328 = vmatprep.subr.bf16.mxu0 %v1557_v1 }
  0x37   :  { %1320 = vmatprep.subr.bf16.mxu1 %v1557_v1 }
  0x39   :  { %1329 = vmatpush3.bf16.msra.mxu0 %v1440_v17  ;;  %v1193_v17 = vld [vmem:[%s1968_s5 + $0x1] ss:$0 sm:$0xff] }
  0x3a   :  { %1321 = vmatpush3.bf16.msra.mxu1 %v1438_v15  ;;  %1330 = vmatprep.subr.bf16.mxu0 %v1557_v1  ;;  %v1449_v15 = vld [vmem:[%s1973_s10 + $0x30] sm:$0xff]  }
  0x3b   :  { %1338 = vmatprep.subr.bf16.mxu1 %v1557_v1  ;;  %588 = vrot.lane.b32.xlu1 %v1193_v17, %s1559_s14 }
  0x3d   :  { %1331 = vmatpush3.bf16.msra.mxu0 %v1441_v27  ;;  %v1195_v27 = vld [vmem:[%s1969_s6 + $0x8] sm:$0xf] }
  0x3e   :  { %1332 = vmatprep.subr.bf16.mxu0 %v1557_v1 }
  0x41   :  { %1333 = vmatpush3.bf16.msra.mxu0 %v1442_v28  ;;  %v1187_v28 = vld [vmem:[%s1974_s11 + $0x1] ss:$0 sm:$0xff] }
  0x42   :  { %1344 = vmatprep.subr.bf16.mxu0 %v1557_v1 }
  0xa3   :  { %v333_v43 = vpop.permute.xlu0 %332 }
 0x107   :  { %v150_v19 = vpop.f32.mrb[0].mxu0 }
 0x108   :  { %v151_v20 = vadd.f32 %v1146_v18, %v150_v19  ;;  %v1312_v21 = vpop.f32.mrb[1].mxu0  ;;  %v1173_v18 = vld [vmem:[#allocation6 + $0x1] ss:$0 sm:$0xff] }
 0x109   :  { %v153_v22 = vpop.f32.mrb[2].mxu0 }
 0x10a   :  { %vm156_vm3 = vcmp.gt.f32.partialorder %v151_v20, 0.0  ;;  %v157_v23 = vmul.f32 0.01, %v151_v20  ;;  %v1313_v24 = vpop.f32.mrb[3].mxu0 }
 0x10c   :  { %v158_v25 = vsel %vm156_vm3, %v151_v20, %v157_v23 }
 0x10d   :  { %v159_v26 = vpack.c.bf16 %v158_v25, %v158_v25 }
 0x10f   :  { %1323 = vmatmul.mubr.msk.bf16.vlgmr.msra.gmra.mrb[0].mxu1 %vm197_vm4, %v159_v26 }
 0x110   :  { %1340 = vmatprep.mubr.msk.bf16.mxu1 %vm1558_vm0, %v1557_v1  ;;  %1339 = vmatpush3.bf16.msra.mxu1 %v369_v41 }
 0x111   :  { %1356 = vmatprep.subr.bf16.mxu1 %v1557_v1 }
 0x1e2   :  { %v235_v31 = vpop.f32.mrb[0].mxu1 }
 0x1e3   :  { %v236_v32 = vadd.f32 %v1148_v30, %v235_v31  ;;  %v1324_v33 = vpop.f32.mrb[1].mxu1  ;;  %v589_v31 = vpop.permute.xlu1 %588 }
 0x1e4   :  { %v238_v34 = vpop.f32.mrb[2].mxu1 }
 0x1e5   :  { %vm241_vm5 = vcmp.gt.f32.partialorder %v236_v32, 0.0  ;;  %v242_v35 = vmul.f32 0.01, %v236_v32  ;;  %v1325_v36 = vpop.f32.mrb[3].mxu1 }
 0x1e7   :  { %v243_v37 = vsel %vm241_vm5, %v236_v32, %v242_v35  ;;  %v1451_v35 = vld [vmem:[%s1971_s8 + $0x40] sm:$0xff]  }
 0x1e8   :  { %v244_v38 = vpack.c.bf16 %v243_v37, %v243_v37 }
 0x1ea   :  { %1335 = vmatmul.mubr.msk.bf16.vlgmr.msra.gmra.mrb[4].mxu0 %vm197_vm4, %v244_v38  ;;  %v1452_v38 = vld [vmem:[%s1971_s8 + $0x48] sm:$0xff]  }
 0x1eb   :  { %1352 = vmatprep.mubr.msk.bf16.mxu0 %vm1558_vm0, %v1557_v1  ;;  %1345 = vmatpush3.bf16.msra.mxu0 %v1443_v53  ;;  %v1454_v53 = vld [vmem:[%s1971_s8 + $0x58] sm:$0xff]  }
 0x1ec   :  { %1346 = vmatprep.subr.bf16.mxu0 %v1557_v1 }
 0x1ef   :  { %1347 = vmatpush3.bf16.msra.mxu0 %v1444_v54  ;;  %v1455_v54 = vld [vmem:[%s1973_s10 + $0x40] sm:$0xff]  }
 0x1f0   :  { %1348 = vmatprep.subr.bf16.mxu0 %v1557_v1 }
 0x1f3   :  { %1349 = vmatpush3.bf16.msra.mxu0 %v1445_v2  ;;  %v1457_v2 = vld [vmem:[%s1973_s10 + $0x50] sm:$0xff]  }
 0x1f4   :  { %1350 = vmatprep.subr.bf16.mxu0 %v1557_v1 }
 0x1f7   :  { %1351 = vmatpush3.bf16.msra.mxu0 %v1446_v3  ;;  %v1458_v3 = vld [vmem:[%s1973_s10 + $0x58] sm:$0xff]  }
 0x1f8   :  { %1368 = vmatprep.subr.bf16.mxu0 %v1557_v1 }
 0x2bd   :  { %v319_v42 = vpop.f32.mrb[4].mxu0 }
 0x2be   :  { %v320_v44 = vadd.f32 %v1154_v40, %v319_v42  ;;  %v1336_v45 = vpop.f32.mrb[5].mxu0 }
 0x2bf   :  { %v322_v46 = vpop.f32.mrb[6].mxu0 }
 0x2c0   :  { %v335_v47 = vmul.f32 %v333_v43, %v320_v44  ;;  %v1337_v48 = vpop.f32.mrb[7].mxu0  ;;  %1467 = vtanh.f32 %v320_v44 }
 0x2c2   :  { %340 = vrot.lane.b32.xlu0 %v335_v47, %s1560_s0  ;;  %v1194_v47 = vld [vmem:[%s1967_s4 + $0x2] ss:$0 sm:$0xff] }
 0x2c6   :  { %844 = vrot.lane.b32.xlu0 %v1741_v49, %s1559_s14 }
 0x2ca   :  { %v1468_v50 = vpop.eup %1467 }
 0x2cb   :  { %v330_v51 = vmul.f32 %v1468_v50, %v1160_v29 }
 0x2cd   :  { %v346_v52 = vsel %vm108_vm2, %v330_v51, 0.0  ;;  %v336_v55 = vmul.f32 1.442695, %v330_v51 }
 0x2cf   :  { %1469 = vpow2.f32 %v336_v55  ;;  %v1456_v55 = vld [vmem:[%s1973_s10 + $0x48] sm:$0xff]  }
 0x2d9   :  { %v1470_v56 = vpop.eup %1469 }
 0x2da   :  { %v338_v57 = vmul.f32 %v1470_v56, %v1676_v10  ;;  %v1196_v56 = vld [vmem:[%s1970_s7 + $0x2] ss:$0 sm:$0xff] }
 0x2e5   :  { %347 = vadd.xlane.f32.xlu0 %v346_v52  ;;  %v1453_v52 = vld [vmem:[%s1971_s8 + $0x50] sm:$0xff]  }
 0x334   :  { %v341_v58 = vpop.permute.xlu0 %340 }
 0x335   :  { %v343_v59 = vadd.f32 %v341_v58, %v338_v57 }
 0x337   :  { %v344_v60 = vmul.f32 %v1160_v29, %v343_v59  ;;  %v625_v29 = vsel %vm112_vm1, %v1195_v27, 0  ;;  %v1459_v27 = vld [vmem:[%s1971_s8 + $0x60] sm:$0xff]  }
 0x339   :  { %v1759_v62 = vadd.f32 %v344_v60, %v1684_v12 }
 0x33b   :  { %v1762_v63 = vmul.f32 %v1161_v61, %v1759_v62 }
 0x33d   :  { %v357_v0 = vpack.c.bf16 %v1762_v63, %v1762_v63 }
 0x33f   :  { %1341 = vmatmul.mubr.msk.bf16.vlgmr.msra.gmra.mrb[4].mxu1 %vm108_vm2, %v357_v0 }
 0x340   :  { %1364 = vmatprep.mubr.msk.bf16.mxu1 %vm1558_vm0, %v1557_v1  ;;  %1357 = vmatpush3.bf16.msra.mxu1 %v1447_v4  ;;  %v1206_v4 = vld [vmem:[#allocation6 + $0x2] ss:$0 sm:$0xff] }
 0x341   :  { %1358 = vmatprep.subr.bf16.mxu1 %v1557_v1 }
 0x344   :  { %1359 = vmatpush3.bf16.msra.mxu1 %v1448_v5 }
 0x345   :  { %1360 = vmatprep.subr.bf16.mxu1 %v1557_v1 }
 0x348   :  { %1361 = vmatpush3.bf16.msra.mxu1 %v1449_v15 }
 0x349   :  { %1362 = vmatprep.subr.bf16.mxu1 %v1557_v1 }
 0x34c   :  { %1363 = vmatpush3.bf16.msra.mxu1 %v1450_v16 }
 0x34d   :  { %1374 = vmatprep.subr.bf16.mxu1 %v1557_v1 }
 0x412   :  { %v405_v7 = vpop.f32.mrb[4].mxu1 }
 0x413   :  { %v406_v8 = vadd.f32 %v1163_v6, %v405_v7  ;;  %v1342_v9 = vpop.f32.mrb[5].mxu1 }
 0x414   :  { %v408_v10 = vpop.f32.mrb[6].mxu1 }
 0x415   :  { %vm411_vm6 = vcmp.gt.f32.partialorder %v406_v8, 0.0  ;;  %v412_v11 = vmul.f32 0.01, %v406_v8  ;;  %v1343_v12 = vpop.f32.mrb[7].mxu1 }
 0x417   :  { %v413_v13 = vsel %vm411_vm6, %v406_v8, %v412_v11 }
 0x418   :  { %v414_v14 = vpack.c.bf16 %v413_v13, %v413_v13  ;;  %v1228_v13 = vld [vmem:[%s1969_s6 + $0xc] sm:$0xf] }
 0x419   :  { %v881_v15 = vsel %vm112_vm1, %v1228_v13, 0 }
 0x41a   :  { %1353 = vmatmul.mubr.msk.bf16.vlgmr.msra.gmra.mrb[8].mxu0 %vm197_vm4, %v414_v14  ;;  %v1220_v14 = vld [vmem:[%s1974_s11 + $0x2] ss:$0 sm:$0xff] }
 0x41b   :  { %1370 = vmatprep.mubr.msk.bf16.mxu0 %vm1558_vm0, %v1557_v1  ;;  %1369 = vmatpush3.bf16.msra.mxu0 %v625_v29 }
 0x41c   :  { %1386 = vmatprep.subr.bf16.mxu0 %v1557_v1 }
 0x4ed   :  { %v490_v19 = vpop.f32.mrb[8].mxu0 }
 0x4ee   :  { %v491_v20 = vadd.f32 %v1173_v18, %v490_v19  ;;  %v1354_v21 = vpop.f32.mrb[9].mxu0  ;;  %v845_v19 = vpop.permute.xlu0 %844 }
 0x4ef   :  { %v493_v22 = vpop.f32.mrb[10].mxu0 }
 0x4f0   :  { %vm496_vm7 = vcmp.gt.f32.partialorder %v491_v20, 0.0  ;;  %v497_v23 = vmul.f32 0.01, %v491_v20  ;;  %v1355_v24 = vpop.f32.mrb[11].mxu0 }
 0x4f2   :  { %v498_v25 = vsel %vm496_vm7, %v491_v20, %v497_v23  ;;  %v348_v13 = vpop.xlane.xlu0 %347 }
 0x4f3   :  { %v499_v26 = vpack.c.bf16 %v498_v25, %v498_v25 }
 0x4f5   :  { %1365 = vmatmul.mubr.msk.bf16.vlgmr.msra.gmra.mrb[8].mxu1 %vm197_vm4, %v499_v26 }
 0x4f6   :  { %1382 = vmatprep.mubr.msk.bf16.mxu1 %vm1558_vm0, %v1557_v1  ;;  %1375 = vmatpush3.bf16.msra.mxu1 %v1451_v35  ;;  %v1227_v35 = vld [vmem:[%s1967_s4 + $0x3] ss:$0 sm:$0xff] }
 0x4f7   :  { %1376 = vmatprep.subr.bf16.mxu1 %v1557_v1 }
 0x4fa   :  { %1377 = vmatpush3.bf16.msra.mxu1 %v1452_v38 }
 0x4fb   :  { %1378 = vmatprep.subr.bf16.mxu1 %v1557_v1 }
 0x4fe   :  { %1379 = vmatpush3.bf16.msra.mxu1 %v1453_v52  ;;  %v1465_v52 = vld [vmem:[%s1973_s10 + $0x70] sm:$0xff]  }
 0x4ff   :  { %1380 = vmatprep.subr.bf16.mxu1 %v1557_v1 }
 0x502   :  { %1381 = vmatpush3.bf16.msra.mxu1 %v1454_v53  ;;  %v1466_v53 = vld [vmem:[%s1973_s10 + $0x78] sm:$0xff]  }
 0x503   :  { %1398 = vmatprep.subr.bf16.mxu1 %v1557_v1 }
 0x5c8   :  { %v575_v30 = vpop.f32.mrb[8].mxu1 }
 0x5c9   :  { %v576_v32 = vadd.f32 %v1187_v28, %v575_v30  ;;  %v1366_v33 = vpop.f32.mrb[9].mxu1  ;;  %v1460_v28 = vld [vmem:[%s1971_s8 + $0x68] sm:$0xff]  }
 0x5ca   :  { %v578_v34 = vpop.f32.mrb[10].mxu1 }
 0x5cb   :  { %v591_v36 = vmul.f32 %v589_v31, %v576_v32  ;;  %v1367_v37 = vpop.f32.mrb[11].mxu1  ;;  %1471 = vtanh.f32 %v576_v32 }
 0x5cd   :  { %596 = vrot.lane.b32.xlu1 %v591_v36, %s1560_s0 }
 0x5d5   :  { %v1472_v39 = vpop.eup %1471 }
 0x5d6   :  { %v1823_v40 = vmul.f32 %v1472_v39, %v1193_v17  ;;  %v1462_v39 = vld [vmem:[%s1971_s8 + $0x78] sm:$0xff]  }
 0x5d8   :  { %v592_v41 = vmul.f32 1.442695, %v1823_v40  ;;  %v602_v26 = vsel %vm108_vm2, %v1823_v40, 0.0  ;;  %v1463_v40 = vld [vmem:[%s1973_s10 + $0x60] sm:$0xff]  }
 0x5da   :  { %1473 = vpow2.f32 %v592_v41  ;;  %v1464_v41 = vld [vmem:[%s1973_s10 + $0x68] sm:$0xff]  }
 0x5e4   :  { %v1474_v42 = vpop.eup %1473 }
 0x5e5   :  { %v594_v43 = vmul.f32 %v1474_v42, %v1759_v62  ;;  %v1229_v42 = vld [vmem:[%s1970_s7 + $0x3] ss:$0 sm:$0xff] }
 0x63f   :  { %v597_v44 = vpop.permute.xlu1 %596 }
 0x640   :  { %v599_v45 = vadd.f32 %v597_v44, %v594_v43 }
 0x642   :  { %v600_v46 = vmul.f32 %v1193_v17, %v599_v45 }
 0x644   :  { %v1831_v48 = vadd.f32 %v600_v46, %v1762_v63 }
 0x646   :  { %v1834_v50 = vmul.f32 %v1194_v47, %v1831_v48 }
 0x648   :  { %v613_v51 = vpack.c.bf16 %v1834_v50, %v1834_v50 }
 0x64a   :  { %1371 = vmatmul.mubr.msk.bf16.vlgmr.msra.gmra.mrb[12].mxu0 %vm108_vm2, %v613_v51 }
 0x64b   :  { %1394 = vmatprep.mubr.msk.bf16.mxu0 %vm1558_vm0, %v1557_v1  ;;  %1387 = vmatpush3.bf16.msra.mxu0 %v1455_v54  ;;  %v1259_v54 = vld [vmem:[%s1968_s5 + $0x3] ss:$0 sm:$0xff]  ;;  %s1561_s5 = smov [#allocation8]  }
 0x64c   :  { %1388 = vmatprep.subr.bf16.mxu0 %v1557_v1 }
 0x64f   :  { %1389 = vmatpush3.bf16.msra.mxu0 %v1456_v55  ;;  %v1239_v55 = vld [vmem:[#allocation6 + $0x3] ss:$0 sm:$0xff] }
 0x650   :  { %1390 = vmatprep.subr.bf16.mxu0 %v1557_v1 }
 0x653   :  { %1391 = vmatpush3.bf16.msra.mxu0 %v1457_v2 }
 0x654   :  { %1392 = vmatprep.subr.bf16.mxu0 %v1557_v1 }
 0x657   :  { %1393 = vmatpush3.bf16.msra.mxu0 %v1458_v3 }
 0x658   :  { %1404 = vmatprep.subr.bf16.mxu0 %v1557_v1 }
 0x71d   :  { %v661_v57 = vpop.f32.mrb[12].mxu0 }
 0x71e   :  { %v662_v58 = vadd.f32 %v1196_v56, %v661_v57  ;;  %v1372_v59 = vpop.f32.mrb[13].mxu0 }
 0x71f   :  { %v664_v60 = vpop.f32.mrb[14].mxu0 }
 0x720   :  { %vm667_vm8 = vcmp.gt.f32.partialorder %v662_v58, 0.0  ;;  %v668_v61 = vmul.f32 0.01, %v662_v58  ;;  %v1373_v62 = vpop.f32.mrb[15].mxu0 }
 0x722   :  { %v669_v63 = vsel %vm667_vm8, %v662_v58, %v668_v61 }
 0x723   :  { %v670_v0 = vpack.c.bf16 %v669_v63, %v669_v63  ;;  %v1253_v63 = vld [vmem:[%s1974_s11 + $0x3] ss:$0 sm:$0xff]  ;;  %s1132_s11 = sshll.u32 %s1561_s5, 4  ;;  %s1133_s11 = int_to_ptr.vmem [resolvable:$true] %s1132_s11 }
 0x724   :  { %p1532_p3 = scmp.lt.s32.totalorder %s1133_s11, %s1133_s11 }
 0x725   :  { %1383 = vmatmul.mubr.msk.bf16.vlgmr.msra.gmra.mrb[12].mxu1 %vm197_vm4, %v670_v0 }
 0x726   :  { %1400 = vmatprep.mubr.msk.bf16.mxu1 %vm1558_vm0, %v1557_v1  ;;  %1399 = vmatpush3.bf16.msra.mxu1 %v881_v15 }
 0x727   :  { %1416 = vmatprep.subr.bf16.mxu1 %v1557_v1 }
 0x7f8   :  { %v746_v5 = vpop.f32.mrb[12].mxu1 }
 0x7f9   :  { %v747_v6 = vadd.f32 %v1206_v4, %v746_v5  ;;  %v1384_v7 = vpop.f32.mrb[13].mxu1 }
 0x7fa   :  { %v749_v8 = vpop.f32.mrb[14].mxu1 }
 0x7fb   :  { %vm752_vm9 = vcmp.gt.f32.partialorder %v747_v6, 0.0  ;;  %v753_v9 = vmul.f32 0.01, %v747_v6  ;;  %v1385_v10 = vpop.f32.mrb[15].mxu1 }
 0x7fd   :  { %v754_v11 = vsel %vm752_vm9, %v747_v6, %v753_v9 }
 0x7fe   :  { %v755_v12 = vpack.c.bf16 %v754_v11, %v754_v11 }
 0x800   :  { %1395 = vmatmul.mubr.msk.bf16.vlgmr.msra.gmra.mrb[16].mxu0 %vm197_vm4, %v755_v12  ;;  %v1144_v12 = vld [vmem:[#allocation2] ss:$0 sm:$0xff] }
 0x801   :  { %1412 = vmatprep.mubr.msk.bf16.mxu0 %vm1558_vm0, %v1557_v1  ;;  %1405 = vmatpush3.bf16.msra.mxu0 %v1459_v27 }
 0x802   :  { %1406 = vmatprep.subr.bf16.mxu0 %v1557_v1 }
 0x805   :  { %1407 = vmatpush3.bf16.msra.mxu0 %v1460_v28 }
 0x806   :  { %1408 = vmatprep.subr.bf16.mxu0 %v1557_v1 }
 0x8d3   :  { %v831_v16 = vpop.f32.mrb[16].mxu0 }
 0x8d4   :  { %v832_v17 = vadd.f32 %v1220_v14, %v831_v16  ;;  %v1396_v18 = vpop.f32.mrb[17].mxu0  ;;  %v349_v14 = vadd.f32 %v1144_v12, %v348_v13 }
 0x8d5   :  { %v834_v20 = vpop.f32.mrb[18].mxu0 }
 0x8d6   :  { %1475 = vtanh.f32 %v832_v17  ;;  %v847_v21 = vmul.f32 %v845_v19, %v832_v17  ;;  %v1397_v22 = vpop.f32.mrb[19].mxu0 }
 0x8d8   :  { %852 = vrot.lane.b32.xlu1 %v847_v21, %s1560_s0 }
 0x8e0   :  { %v1476_v23 = vpop.eup %1475 }
 0x8e1   :  { %v842_v24 = vmul.f32 %v1476_v23, %v1741_v49 }
 0x8e3   :  { %v858_v25 = vsel %vm108_vm2, %v842_v24, 0.0  ;;  %v848_v29 = vmul.f32 1.442695, %v842_v24 }
 0x8e4   :  { %859 = vadd.xlane.f32.xlu0 %v858_v25 }
 0x8e5   :  { %1477 = vpow2.f32 %v848_v29 }
 0x8ef   :  { %v1478_v30 = vpop.eup %1477 }
 0x8f0   :  { %v850_v31 = vmul.f32 %v1478_v30, %v1831_v48 }
 0x8fc   :  { %603 = vadd.xlane.f32.xlu1 %v602_v26 }
 0x90d   :  { %1100 = vrot.lane.b32.xlu1 %v1259_v54, %s1559_s14 }
 0x94a   :  { %v853_v32 = vpop.permute.xlu1 %852 }
 0x94b   :  { %v855_v33 = vadd.f32 %v853_v32, %v850_v31 }
 0x94d   :  { %v856_v34 = vmul.f32 %v1741_v49, %v855_v33  ;;  %v1461_v49 = vld [vmem:[%s1971_s8 + $0x70] sm:$0xff]  }
 0x94e   :  { %1409 = vmatpush3.bf16.msra.mxu0 %v1461_v49 }
 0x94f   :  { %v1901_v36 = vadd.f32 %v856_v34, %v1834_v50  ;;  %1410 = vmatprep.subr.bf16.mxu0 %v1557_v1 }
 0x951   :  { %v1904_v37 = vmul.f32 %v1227_v35, %v1901_v36 }
 0x952   :  { %1411 = vmatpush3.bf16.msra.mxu0 %v1462_v39 }
 0x953   :  { %v869_v38 = vpack.c.bf16 %v1904_v37, %v1904_v37 }
 0x955   :  { %1401 = vmatmul.mubr.msk.bf16.vlgmr.msra.gmra.mrb[16].mxu1 %vm108_vm2, %v869_v38 }
 0x956   :  { %1424 = vmatprep.mubr.msk.bf16.mxu1 %vm1558_vm0, %v1557_v1  ;;  %1417 = vmatpush3.bf16.msra.mxu1 %v1463_v40 }
 0x957   :  { %1418 = vmatprep.subr.bf16.mxu1 %v1557_v1 }
 0x95a   :  { %1419 = vmatpush3.bf16.msra.mxu1 %v1464_v41 }
 0x95b   :  { %1420 = vmatprep.subr.bf16.mxu1 %v1557_v1 }
 0x95e   :  { %1421 = vmatpush3.bf16.msra.mxu1 %v1465_v52 }
 0x95f   :  { %1422 = vmatprep.subr.bf16.mxu1 %v1557_v1 }
 0x962   :  { %1423 = vmatpush3.bf16.msra.mxu1 %v1466_v53 }
 0x971   :  { %v860_v16 = vpop.xlane.xlu0 %859 }
 0x989   :  { %v604_v9 = vpop.xlane.xlu1 %603 }
 0x98a   :  { %v605_v15 = vadd.f32 %v604_v9, %v349_v14 }
 0x98c   :  { %v861_v17 = vadd.f32 %v860_v16, %v605_v15 }
 0x98d   :  { %v1101_v10 = vpop.permute.xlu1 %1100 }
 0xa28   :  { %v917_v43 = vpop.f32.mrb[16].mxu1 }
 0xa29   :  { %v918_v44 = vadd.f32 %v1229_v42, %v917_v43  ;;  %v1402_v45 = vpop.f32.mrb[17].mxu1 }
 0xa2a   :  { %v920_v46 = vpop.f32.mrb[18].mxu1 }
 0xa2b   :  { %vm923_vm10 = vcmp.gt.f32.partialorder %v918_v44, 0.0  ;;  %v924_v47 = vmul.f32 0.01, %v918_v44  ;;  %v1403_v48 = vpop.f32.mrb[19].mxu1 }
 0xa2d   :  { %v925_v50 = vsel %vm923_vm10, %v918_v44, %v924_v47 }
 0xa2e   :  { %v926_v51 = vpack.c.bf16 %v925_v50, %v925_v50 }
 0xa30   :  { %1413 = vmatmul.mubr.msk.bf16.vlgmr.msra.gmra.mrb[20].mxu0 %vm197_vm4, %v926_v51 }
 0xb03   :  { %v1002_v56 = vpop.f32.mrb[20].mxu0 }
 0xb04   :  { %v1003_v57 = vadd.f32 %v1239_v55, %v1002_v56  ;;  %v1414_v58 = vpop.f32.mrb[21].mxu0 }
 0xb05   :  { %v1005_v59 = vpop.f32.mrb[22].mxu0 }
 0xb06   :  { %vm1008_vm11 = vcmp.gt.f32.partialorder %v1003_v57, 0.0  ;;  %v1009_v60 = vmul.f32 0.01, %v1003_v57  ;;  %v1415_v61 = vpop.f32.mrb[23].mxu0 }
 0xb08   :  { %v1010_v1 = vsel %vm1008_vm11, %v1003_v57, %v1009_v60 }
 0xb09   :  { %v1011_v62 = vpack.c.bf16 %v1010_v1, %v1010_v1 }
 0xb0b   :  { %1425 = vmatmul.mubr.msk.bf16.vlgmr.msra.gmra.mrb[20].mxu1 %vm197_vm4, %v1011_v62 }
 0xbde   :  { %v1087_v0 = vpop.f32.mrb[20].mxu1 }
 0xbdf   :  { %v1088_v2 = vadd.f32 %v1253_v63, %v1087_v0  ;;  %v1426_v3 = vpop.f32.mrb[21].mxu1 }
 0xbe0   :  { %v1090_v4 = vpop.f32.mrb[22].mxu1 }
 0xbe1   :  { %1479 = vtanh.f32 %v1088_v2  ;;  %v1427_v5 = vpop.f32.mrb[23].mxu1  ;;  %v1103_v11 = vmul.f32 %v1101_v10, %v1088_v2 }
 0xbeb   :  { %v1480_v6 = vpop.eup %1479 }
 0xbec   :  { %v1098_v7 = vmul.f32 %v1480_v6, %v1259_v54 }
 0xbee   :  { %v1114_v8 = vsel %vm108_vm2, %v1098_v7, 0.0  ;;  %v1104_v20 = vmul.f32 1.442695, %v1098_v7 }
 0xbef   :  { %1115 = vadd.xlane.f32.xlu0 %v1114_v8 }
 0xbf0   :  { %1481 = vpow2.f32 %v1104_v20 }
 0xbfa   :  { %v1482_v21 = vpop.eup %1481 }
 0xbfb   :  { %v1106_v23 = vmul.f32 %v1482_v21, %v1901_v36 }
 0xc05   :  { %1108 = vrot.lane.b32.xlu0 %v1103_v11, %s1560_s0 }
 0xc7c   :  { %v1116_v18 = vpop.xlane.xlu0 %1115 }
 0xc7d   :  { %v1117_v19 = vadd.f32 %v1116_v18, %v861_v17 }
 0xc7f   :  { %1119 = vrot.lane.b32.xlu1 %v1117_v19, %s1559_s14  ;;  %s1527_s14 = scalar_lea.vmem %s1133_s11, 128 }
 0xc80   :  { %v1109_v22 = vpop.permute.xlu0 %1108  ;;  %p1528_p2 = scmp.ne.s32.totalorder %s1133_s11, %s1527_s14  ;;  %p1533_p4 = scmp.lt.s32.totalorder %s1527_s14, %s1527_s14 }
 0xc81   :  { %v1111_v24 = vadd.f32 %v1109_v22, %v1106_v23 }
 0xc82   :  { %p1534_p5 = por %p1533_p4, %p1532_p3 }
 0xc83   :  { %v1112_v25 = vmul.f32 %v1259_v54, %v1111_v24 }
 0xc84   :  { %p1535_p6 = pnand %p1534_p5, %p1528_p2 }
 0xc85   :  { %v1113_v26 = vadd.f32 %v1112_v25, %v1904_v37 }
 0xcf1   :  { %v1120_v27 = vpop.permute.xlu1 %1119 }
 0xcf2   :  { %v1122_v28 = vsel %vm108_vm2, %v1113_v26, %v1120_v27 }
 0xcf3   :  { %v1124_v29 = vsel %vm1123_vm12, %v1122_v28, 0.0 }
 0xcf4   :  { %1125 = vst [vmem:[#allocation8] sm:$0xff] %v1124_v29 }
 0xcf5   :  { %1538 = shalt.err (!%p1535_p6)
}
 0xcf6   :  { %s1539_s28 = scalar_lea.hbm %s1975_s12, 128 }
 0xcf7   :  { %p1540_p7 = scmp.ne.s32.totalorder %s1975_s12, %s1539_s28  ;;  %p1543_p8 = scmp.lt.u32.totalorder %s1539_s28, %s1975_s12 }
 0xcf9   :  { %p1545_p9 = pnand %p1543_p8, %p1540_p7 }
 0xcfb   :  { %1548 = shalt.err (!%p1545_p9)
}
 0xcfc   :  { %1135 = dma.vmem_to_hbm [thread:$0]  %s1133_s11, 128, %s1975_s12, [#allocation5]  }
 0xcfd   :  { %1553 = dma.done.wait [#allocation5], 128  }
 0xcfe   :  { %1554 = vsyncadd [#allocation5], 4294967168 }
 0xcff   :  { %1139 = vsyncpa [#allocation4], 1 }
 0xd00   :  { %1140 = vsyncpa [#allocation7], 1 }
 0xd01   :  { %1141 = vsyncpa [#allocation5], 1 }

</bundles_post_ra>
